<compile_context>
chip_gen: v7x
topology: tpu7x:2x2x1
jax: 0.10.0
libtpu: 0.0.40
codegen_flags: <defaults>
</compile_context>

<pallas_src>
import jax
import jax.numpy as jnp
from jax.experimental import pallas as pl
from jax.experimental.pallas import tpu as pltpu

HIDDEN = 50
IN_FEATURES = 1
OUT_FEATURES = 1
F_PAD = 128          # lane-padded feature width
TM = 128             # row tile / batch bucket granularity


def _mlp_kernel(x_ref, rows_ref, w_ref, o_ref):
    x = x_ref[...]                 # (TM, 1) f32
    rows = rows_ref[...]           # (8, F_PAD) f32: [w1_row, b1, b2, b3, b4, 0, 0, 0]
    w1 = rows[0:1, :]
    b1 = rows[1:2, :]
    b2 = rows[2:3, :]
    b3 = rows[3:4, :]
    b4 = rows[4:5, :]

    cdt = w_ref.dtype              # bf16 on every generation (f32 accumulation below)

    # Layer 1: in_features == 1 -> outer-product broadcast on the VPU (no MXU pass).
    h = jnp.maximum(x * w1 + b1, 0.0)                                        # (TM, F_PAD)
    # Hidden layers: MXU matmuls, bf16 operands, f32 accumulation.
    h = jnp.maximum(
        jnp.dot(h.astype(cdt), w_ref[0], preferred_element_type=jnp.float32) + b2, 0.0)
    h = jnp.maximum(
        jnp.dot(h.astype(cdt), w_ref[1], preferred_element_type=jnp.float32) + b3, 0.0)
    o_ref[...] = (
        jnp.dot(h.astype(cdt), w_ref[2], preferred_element_type=jnp.float32) + b4
    ).astype(o_ref.dtype)


def pack_params(params, compute_dtype=jnp.bfloat16):
    """One-time padding/packing of parameters into two TPU-friendly operands."""
    rows = jnp.zeros((8, F_PAD), jnp.float32)
    rows = rows.at[0, :HIDDEN].set(params["w1"][0, :])        # w1 row (1 -> 50)
    rows = rows.at[1, :HIDDEN].set(params["b1"])
    rows = rows.at[2, :HIDDEN].set(params["b2"])
    rows = rows.at[3, :HIDDEN].set(params["b3"])
    rows = rows.at[4, :OUT_FEATURES].set(params["b4"])

    w_hid = jnp.zeros((3, F_PAD, F_PAD), jnp.float32)
    w_hid = w_hid.at[0, :HIDDEN, :HIDDEN].set(params["w2"])
    w_hid = w_hid.at[1, :HIDDEN, :HIDDEN].set(params["w3"])
    w_hid = w_hid.at[2, :HIDDEN, :OUT_FEATURES].set(params["w4"])

    return {"rows": rows, "w_hid": w_hid.astype(compute_dtype)}


def pad_input(x):
    """One-time bucketing of x to (N_PAD, 1) with N_PAD a multiple of TM.

    Keep this OUTSIDE the per-call hot path: the jitted forward below is then a
    single pallas_call dispatch with no extra pad/slice ops around it.
    """
    n = x.shape[0]
    n_pad = max(TM, ((n + TM - 1) // TM) * TM)
    return jnp.pad(x.astype(jnp.float32), ((0, n_pad - n), (0, 0))), n


@jax.jit
def net_forward_padded(xp, rows, w_hid):
    """xp: (N_PAD, 1) f32, N_PAD % TM == 0. Returns lane-dense (N_PAD, 128) f32."""
    n_pad = xp.shape[0]
    n_tiles = n_pad // TM

    flops = n_tiles * (3 * 2 * TM * F_PAD * F_PAD)            # three MXU passes per tile
    bytes_accessed = (xp.size * xp.dtype.itemsize
                      + rows.size * rows.dtype.itemsize
                      + w_hid.size * w_hid.dtype.itemsize
                      + n_pad * F_PAD * 4)

    return pl.pallas_call(
        _mlp_kernel,
        out_shape=jax.ShapeDtypeStruct((n_pad, F_PAD), jnp.float32),
        grid=(n_tiles,),
        in_specs=[
            pl.BlockSpec((TM, 1), lambda i: (i, 0)),                 # row tile of x
            pl.BlockSpec((8, F_PAD), lambda i: (0, 0)),              # weights: fetched once,
            pl.BlockSpec((3, F_PAD, F_PAD), lambda i: (0, 0, 0)),    # VMEM-resident across tiles
        ],
        out_specs=pl.BlockSpec((TM, F_PAD), lambda i: (i, 0)),
        compiler_params=pltpu.CompilerParams(
            dimension_semantics=("parallel",)),                      # v7x: shard tiles over 2 TCs
        cost_estimate=pl.CostEstimate(
            flops=flops, transcendentals=0, bytes_accessed=bytes_accessed),
    )(xp, rows, w_hid)


def net_forward(x, packed):
    """Convenience wrapper: pad -> kernel -> slice. For repeated calls, prefer
    padding once with pad_input() and calling net_forward_padded directly."""
    xp, n = pad_input(x)
    out_pad = net_forward_padded(xp, packed["rows"], packed["w_hid"])
    return out_pad[:n, :OUT_FEATURES]


def init_params(key):
    """Deterministic init mirroring nn.Linear's U(-1/sqrt(fan_in), 1/sqrt(fan_in))."""
    dims = [(IN_FEATURES, HIDDEN), (HIDDEN, HIDDEN), (HIDDEN, HIDDEN), (HIDDEN, OUT_FEATURES)]
    params = {}
    keys = jax.random.split(key, 2 * len(dims))
    for i, (fan_in, fan_out) in enumerate(dims):
        bound = 1.0 / jnp.sqrt(jnp.float32(fan_in))
        params[f"w{i+1}"] = jax.random.uniform(
            keys[2 * i], (fan_in, fan_out), jnp.float32, -bound, bound)
        params[f"b{i+1}"] = jax.random.uniform(
            keys[2 * i + 1], (fan_out,), jnp.float32, -bound, bound)
    return params


def net_forward_ref(x, params, compute_dtype):
    """Pure-JAX reference mirroring the kernel's compute dtype (f32 accumulation)."""
    def mm(a, w):
        return jax.lax.dot(a.astype(compute_dtype), w.astype(compute_dtype),
                           preferred_element_type=jnp.float32)
    h = jnp.maximum(x @ params["w1"] + params["b1"], 0.0)   # layer 1 stays f32 (VPU path)
    h = jnp.maximum(mm(h, params["w2"]) + params["b2"], 0.0)
    h = jnp.maximum(mm(h, params["w3"]) + params["b3"], 0.0)
    return mm(h, params["w4"]) + params["b4"]


def net_forward_ref_f32(x, params):
    """Full-f32 reference of the original module."""
    h = jnp.maximum(x @ params["w1"] + params["b1"], 0.0)
    h = jnp.maximum(h @ params["w2"] + params["b2"], 0.0)
    h = jnp.maximum(h @ params["w3"] + params["b3"], 0.0)
    return h @ params["w4"] + params["b4"]


if __name__ == "__main__":
    key = jax.random.PRNGKey(0)
    pkey, _ = jax.random.split(key)
    params = init_params(pkey)

    compute_dtype = jnp.bfloat16                      # bf16 MXU operands on all generations
    packed = pack_params(params, compute_dtype)       # padded/packed ONCE, reused every call

    # Regression-style input: 100 points in [-2pi, 2pi], shape (100, 1), like the
    # original script's np.linspace(-2*pi, 2*pi, 100).
    x = jnp.linspace(-2.0 * jnp.pi, 2.0 * jnp.pi, 100, dtype=jnp.float32)[:, None]

    # Hot path: pad once, then the forward is a single pallas_call dispatch.
    xp, n = pad_input(x)
    out_pad = net_forward_padded(xp, packed["rows"], packed["w_hid"])
    out_pad = jax.block_until_ready(out_pad)
    out = out_pad[:n, :OUT_FEATURES]

    assert out.shape == (100, 1), out.shape

    # Check 1: against a reference that mirrors the kernel's compute dtypes
    # (bf16 operands, f32 accumulation) -- only MXU vs XLA accumulation-order noise.
    ref = net_forward_ref(x, params, compute_dtype)
    assert jnp.allclose(out, ref, atol=2e-3, rtol=2e-3), float(jnp.max(jnp.abs(out - ref)))

    # Check 2 (loose, atol-only): against the full-f32 module to bound bf16 operand error.
    ref32 = net_forward_ref_f32(x, params)
    assert jnp.allclose(out, ref32, atol=5e-2), float(jnp.max(jnp.abs(out - ref32)))

    print("KERNEL_OK")
</pallas_src>

<mosaic_0001>
module attributes {stable_mosaic.version = 11 : i64} {
  func.func @_mlp_kernel(%arg0: i32, %arg1: memref<128x1xf32, #tpu.memory_space<vmem>>, %arg2: memref<8x128xf32, #tpu.memory_space<vmem>>, %arg3: memref<3x128x128xbf16, #tpu.memory_space<vmem>>, %arg4: memref<128x128xf32, #tpu.memory_space<vmem>>) attributes {dimension_semantics = [#tpu.dimension_semantics<parallel>], iteration_bounds = array<i64: 1>, scalar_prefetch = 0 : i64, scratch_operands = 0 : i64, tpu.core_type = #tpu.core_type<tc>, window_params = [{transform_indices = @transform_0, window_bounds = array<i64: 128, 1>}, {pipeline_mode = #tpu.pipeline_mode<synchronous>, transform_indices = @transform_1, window_bounds = array<i64: 8, 128>}, {pipeline_mode = #tpu.pipeline_mode<synchronous>, transform_indices = @transform_2, window_bounds = array<i64: 3, 128, 128>}, {transform_indices = @transform_3, window_bounds = array<i64: 128, 128>}]} {
    %c0 = arith.constant 0 : index
    %c0_0 = arith.constant 0 : index
    %0 = vector.load %arg1[%c0, %c0_0] : memref<128x1xf32, #tpu.memory_space<vmem>>, vector<128x1xf32>
    %c0_1 = arith.constant 0 : index
    %c0_2 = arith.constant 0 : index
    %1 = vector.load %arg2[%c0_1, %c0_2] : memref<8x128xf32, #tpu.memory_space<vmem>>, vector<8x128xf32>
    %2 = vector.extract_strided_slice %1 {offsets = [0, 0], sizes = [1, 128], strides = [1, 1]} : vector<8x128xf32> to vector<1x128xf32>
    %3 = vector.extract_strided_slice %1 {offsets = [1, 0], sizes = [1, 128], strides = [1, 1]} : vector<8x128xf32> to vector<1x128xf32>
    %4 = vector.extract_strided_slice %1 {offsets = [2, 0], sizes = [1, 128], strides = [1, 1]} : vector<8x128xf32> to vector<1x128xf32>
    %5 = vector.extract_strided_slice %1 {offsets = [3, 0], sizes = [1, 128], strides = [1, 1]} : vector<8x128xf32> to vector<1x128xf32>
    %6 = vector.extract_strided_slice %1 {offsets = [4, 0], sizes = [1, 128], strides = [1, 1]} : vector<8x128xf32> to vector<1x128xf32>
    %7 = vector.broadcast %0 : vector<128x1xf32> to vector<128x128xf32>
    %8 = vector.broadcast %2 : vector<1x128xf32> to vector<128x128xf32>
    %9 = arith.mulf %7, %8 : vector<128x128xf32>
    %10 = vector.broadcast %3 : vector<1x128xf32> to vector<128x128xf32>
    %11 = arith.addf %9, %10 : vector<128x128xf32>
    %cst = arith.constant 0.000000e+00 : f32
    %12 = vector.broadcast %cst : f32 to vector<128x128xf32>
    %13 = arith.maximumf %11, %12 : vector<128x128xf32>
    %14 = arith.truncf %13 : vector<128x128xf32> to vector<128x128xbf16>
    %c0_3 = arith.constant 0 : index
    %c0_4 = arith.constant 0 : index
    %c0_5 = arith.constant 0 : index
    %15 = vector.load %arg3[%c0_3, %c0_4, %c0_5] : memref<3x128x128xbf16, #tpu.memory_space<vmem>>, vector<1x128x128xbf16>
    %16 = vector.shape_cast %15 : vector<1x128x128xbf16> to vector<128x128xbf16>
    %cst_6 = arith.constant dense<0.000000e+00> : vector<128x128xf32>
    %17 = tpu.matmul %14, %16, %cst_6 {dimension_numbers = #tpu.dot_dimension_numbers<[1], [0], [0], [1], [0, 0, 1, 1], [], []>} : vector<128x128xbf16>, vector<128x128xbf16>, vector<128x128xf32> -> vector<128x128xf32>
    %18 = vector.broadcast %4 : vector<1x128xf32> to vector<128x128xf32>
    %19 = arith.addf %17, %18 : vector<128x128xf32>
    %cst_7 = arith.constant 0.000000e+00 : f32
    %20 = vector.broadcast %cst_7 : f32 to vector<128x128xf32>
    %21 = arith.maximumf %19, %20 : vector<128x128xf32>
    %22 = arith.truncf %21 : vector<128x128xf32> to vector<128x128xbf16>
    %c1 = arith.constant 1 : index
    %c0_8 = arith.constant 0 : index
    %c0_9 = arith.constant 0 : index
    %23 = vector.load %arg3[%c1, %c0_8, %c0_9] : memref<3x128x128xbf16, #tpu.memory_space<vmem>>, vector<1x128x128xbf16>
    %24 = vector.shape_cast %23 : vector<1x128x128xbf16> to vector<128x128xbf16>
    %cst_10 = arith.constant dense<0.000000e+00> : vector<128x128xf32>
    %25 = tpu.matmul %22, %24, %cst_10 {dimension_numbers = #tpu.dot_dimension_numbers<[1], [0], [0], [1], [0, 0, 1, 1], [], []>} : vector<128x128xbf16>, vector<128x128xbf16>, vector<128x128xf32> -> vector<128x128xf32>
    %26 = vector.broadcast %5 : vector<1x128xf32> to vector<128x128xf32>
    %27 = arith.addf %25, %26 : vector<128x128xf32>
    %cst_11 = arith.constant 0.000000e+00 : f32
    %28 = vector.broadcast %cst_11 : f32 to vector<128x128xf32>
    %29 = arith.maximumf %27, %28 : vector<128x128xf32>
    %30 = arith.truncf %29 : vector<128x128xf32> to vector<128x128xbf16>
    %c2 = arith.constant 2 : index
    %c0_12 = arith.constant 0 : index
    %c0_13 = arith.constant 0 : index
    %31 = vector.load %arg3[%c2, %c0_12, %c0_13] : memref<3x128x128xbf16, #tpu.memory_space<vmem>>, vector<1x128x128xbf16>
    %32 = vector.shape_cast %31 : vector<1x128x128xbf16> to vector<128x128xbf16>
    %cst_14 = arith.constant dense<0.000000e+00> : vector<128x128xf32>
    %33 = tpu.matmul %30, %32, %cst_14 {dimension_numbers = #tpu.dot_dimension_numbers<[1], [0], [0], [1], [0, 0, 1, 1], [], []>} : vector<128x128xbf16>, vector<128x128xbf16>, vector<128x128xf32> -> vector<128x128xf32>
    %34 = vector.broadcast %6 : vector<1x128xf32> to vector<128x128xf32>
    %35 = arith.addf %33, %34 : vector<128x128xf32>
    %c0_15 = arith.constant 0 : index
    %c0_16 = arith.constant 0 : index
    %36 = vector.load %arg4[%c0_15, %c0_16] : memref<128x128xf32, #tpu.memory_space<vmem>>, vector<128x128xf32>
    tpu.vector_store %arg4[%c0_15, %c0_16], %35 {strides = array<i32>} : memref<128x128xf32, #tpu.memory_space<vmem>>, vector<128x128xf32>,
    return
  }
  func.func @transform_0(%arg0: i32) -> (i32, i32) {
    %c0_i32 = arith.constant 0 : i32
    %c0_i32_0 = arith.constant 0 : i32
    return %arg0, %c0_i32 : i32, i32
  }
  func.func @transform_1(%arg0: i32) -> (i32, i32) {
    %c0_i32 = arith.constant 0 : i32
    %c0_i32_0 = arith.constant 0 : i32
    %c0_i32_1 = arith.constant 0 : i32
    return %c0_i32, %c0_i32_0 : i32, i32
  }
  func.func @transform_2(%arg0: i32) -> (i32, i32, i32) {
    %c0_i32 = arith.constant 0 : i32
    %c0_i32_0 = arith.constant 0 : i32
    %c0_i32_1 = arith.constant 0 : i32
    %c0_i32_2 = arith.constant 0 : i32
    return %c0_i32, %c0_i32_0, %c0_i32_1 : i32, i32, i32
  }
  func.func @transform_3(%arg0: i32) -> (i32, i32) {
    %c0_i32 = arith.constant 0 : i32
    %c0_i32_0 = arith.constant 0 : i32
    return %arg0, %c0_i32 : i32, i32
  }
}

</mosaic_0001>

<bundles_post_ra>
// kernel: net_forward_padded.1
= control target key start
LH: loop header
LB: loop body
LE: loop exit
PB: predicated region body
PF: predicated region fallthrough
CT: control target
= control target key end

     0   :  { %8 = vsyncpa [#allocation3], 0  ;;  %s1222_s0 = inlined_call_operand.vmem [shape: f32[128,1], index: 0, kind: input, shape index: {}]   ;;  %s1223_s1 = inlined_call_operand.vmem [shape: f32[8,128], index: 1, kind: input, shape index: {}]   ;;  %s1224_s2 = inlined_call_operand.hbm [shape: bf16[3,128,128], index: 2, kind: input, shape index: {}]   ;;  %s1225_s3 = inlined_call_operand.hbm [shape: f32[128,128], index: 3, kind: output, shape index: {}]  }
   0x1   :  { %9 = vsyncpa [#allocation4], 0  ;;  %s1034_s12 = smov [#allocation2]   ;;  %s986_s16 = scalar_lea.hbm %s1224_s2, 3072 }
   0x2   :  { %s19_s13 = sshll.u32 %s1034_s12, 4  ;;  %p987_p0 = scmp.ne.s32.totalorder %s1224_s2, %s986_s16  ;;  %s20_s13 = int_to_ptr.vmem [resolvable:$true] %s19_s13 }
   0x3   :  { %p990_p1 = scmp.lt.u32.totalorder %s986_s16, %s1224_s2 }
   0x5   :  { %p992_p2 = pnand %p990_p1, %p987_p0 }
   0x7   :  { %995 = shalt.err (!%p992_p2)
}
   0x8   :  { %s996_s21 = scalar_lea.vmem %s20_s13, 3072  ;;  %p1001_p4 = scmp.lt.s32.totalorder %s20_s13, %s20_s13 }
   0x9   :  { %p997_p3 = scmp.ne.s32.totalorder %s20_s13, %s996_s21  ;;  %p1002_p5 = scmp.lt.s32.totalorder %s996_s21, %s996_s21 }
   0xb   :  { %p1003_p6 = por %p1002_p5, %p1001_p4 }
   0xd   :  { %p1004_p7 = pnand %p1003_p6, %p997_p3 }
   0xf   :  { %1007 = shalt.err (!%p1004_p7)
}
  0x10   :  { %s1035_s22 = smov 64   ;;  %s1036_s23 = smov 4  }
  0x11   :  { %25 = dma.hbm_to_vmem [thread:$0]  %s1224_s2, 3072, %s20_s13, [#allocation3], %s1035_s22, %s1035_s22, %s1036_s23  }
  0x12   :  { %1030 = dma.done.wait [#allocation3], 3072  }
  0x13   :  { %1031 = vsyncadd [#allocation3], 4294964224  ;;  %v1037_v0 = vmov 0   ;;  %v32_v1 = vld [vmem:[%s1222_s0 + $0x10] sm:$0xff]  ;;  %v30_v2 = vld [vmem:[%s1222_s0] sm:$0xff]  ;;  %v127_v31 = vlaneseq }
  0x14   :  { %961 = vset.pattern.permute.xlu1 %v1037_v0  ;;  %960 = vset.pattern.permute.xlu0 %v1037_v0  ;;  %v33_v3 = vld [vmem:[%s1222_s0 + $0x18] sm:$0xff]  ;;  %v31_v4 = vld [vmem:[%s1222_s0 + $0x8] sm:$0xff]  ;;  %v34_v6 = vld [vmem:[%s1222_s0 + $0x20] sm:$0xff] }
  0x15   :  { %59 = vperm.xlu1 %961, %v32_v1   ;;  %49 = vperm.xlu0 %960, %v30_v2   ;;  %v35_v5 = vld [vmem:[%s1222_s0 + $0x28] sm:$0xff]  ;;  %v963_v8 = vld [vmem:[#allocation2 + $0x8] sm:$0xff]   ;;  %v37_v9 = vld [vmem:[%s1222_s0 + $0x38] sm:$0xff]  ;;  %v1121_v32 = vshrl.u32 %v127_v31, 7 }
  0x16   :  { %v962_v7 = vld [vmem:[#allocation2] sm:$0xff]   ;;  %v36_v10 = vld [vmem:[%s1222_s0 + $0x30] sm:$0xff]  ;;  %v964_v11 = vld [vmem:[#allocation2 + $0x10] sm:$0xff]  }
  0x17   :  { %841 = vmatprep.subr.bf16.mxu0 %v962_v7  ;;  %v39_v12 = vld [vmem:[%s1222_s0 + $0x48] sm:$0xff]  ;;  %v38_v13 = vld [vmem:[%s1222_s0 + $0x40] sm:$0xff]  ;;  %v41_v15 = vld [vmem:[%s1222_s0 + $0x58] sm:$0xff]  ;;  %v129_v33 = vsub.s32 0, %v1121_v32  ;;  %v149_v35 = vsub.s32 1, %v1121_v32 }
  0x18   :  { %842 = vmatpush3.bf16.msra.mxu0 %v962_v7  ;;  %v965_v14 = vld [vmem:[#allocation2 + $0x18] sm:$0xff]   ;;  %v40_v16 = vld [vmem:[%s1222_s0 + $0x50] sm:$0xff]  ;;  %v966_v17 = vld [vmem:[#allocation2 + $0x20] sm:$0xff]  }
  0x19   :  { %64 = vperm.xlu1 %961, %v33_v3   ;;  %54 = vperm.xlu0 %960, %v31_v4   ;;  %v43_v18 = vld [vmem:[%s1222_s0 + $0x68] sm:$0xff]  ;;  %v42_v19 = vld [vmem:[%s1222_s0 + $0x60] sm:$0xff]  ;;  %v967_v20 = vld [vmem:[#allocation2 + $0x28] sm:$0xff]  }
  0x1a   :  { %843 = vmatprep.subr.bf16.mxu0 %v963_v8  ;;  %v45_v21 = vld [vmem:[%s1222_s0 + $0x78] sm:$0xff]  ;;  %v44_v22 = vld [vmem:[%s1222_s0 + $0x70] sm:$0xff]  ;;  %v969_v24 = vld [vmem:[#allocation2 + $0x38] sm:$0xff]  }
  0x1b   :  { %v968_v23 = vld [vmem:[#allocation2 + $0x30] sm:$0xff]   ;;  %v970_v25 = vld [vmem:[#allocation2 + $0x40] sm:$0xff]   ;;  %v971_v26 = vld [vmem:[#allocation2 + $0x48] sm:$0xff]  }
  0x1c   :  { %844 = vmatpush3.bf16.msra.mxu0 %v963_v8  ;;  %873 = vmatprep.subr.bf16.mxu1 %v970_v25  ;;  %v972_v27 = vld [vmem:[#allocation2 + $0x50] sm:$0xff]   ;;  %v973_v28 = vld [vmem:[#allocation2 + $0x58] sm:$0xff]   ;;  %v974_v29 = vld [vmem:[#allocation2 + $0x60] sm:$0xff]  }
  0x1d   :  { %74 = vperm.xlu1 %961, %v35_v5   ;;  %69 = vperm.xlu0 %960, %v34_v6   ;;  %v975_v30 = vld [vmem:[#allocation2 + $0x68] sm:$0xff]   ;;  %v1127_v34 = vld [vmem:[%s1223_s1] sm:$0xff]  ;;  %s1038_s1 = smov [#allocation5]  }
  0x1e   :  { %845 = vmatprep.subr.bf16.mxu0 %v964_v11  ;;  %874 = vmatpush3.bf16.msra.mxu1 %v970_v25  ;;  %v1131_v36 = vrot.slane %v1127_v34, %v129_v33  ;;  %v1134_v37 = vrot.slane %v1127_v34, %v149_v35  ;;  %s757_s4 = sshll.u32 %s1038_s1, 4  ;;  %s758_s4 = int_to_ptr.vmem [resolvable:$true] %s757_s4 }
  0x1f   :  { %875 = vmatprep.subr.bf16.mxu1 %v971_v26  ;;  %s1008_s2 = scalar_lea.vmem %s758_s4, 2048  ;;  %p1013_p9 = scmp.lt.s32.totalorder %s758_s4, %s758_s4 }
  0x20   :  { %846 = vmatpush3.bf16.msra.mxu0 %v964_v11  ;;  %p1009_p8 = scmp.ne.s32.totalorder %s758_s4, %s1008_s2  ;;  %p1014_p10 = scmp.lt.s32.totalorder %s1008_s2, %s1008_s2 }
  0x21   :  { %84 = vperm.xlu1 %961, %v37_v9   ;;  %79 = vperm.xlu0 %960, %v36_v10  }
  0x22   :  { %847 = vmatprep.subr.bf16.mxu0 %v965_v14  ;;  %876 = vmatpush3.bf16.msra.mxu1 %v971_v26  ;;  %p1015_p11 = por %p1014_p10, %p1013_p9 }
  0x23   :  { %877 = vmatprep.subr.bf16.mxu1 %v972_v27 }
  0x24   :  { %848 = vmatpush3.bf16.msra.mxu0 %v965_v14  ;;  %p1016_p12 = pnand %p1015_p11, %p1009_p8 }
  0x25   :  { %94 = vperm.xlu1 %961, %v39_v12   ;;  %89 = vperm.xlu0 %960, %v38_v13  }
  0x26   :  { %849 = vmatprep.subr.bf16.mxu0 %v966_v17  ;;  %878 = vmatpush3.bf16.msra.mxu1 %v972_v27 }
  0x27   :  { %879 = vmatprep.subr.bf16.mxu1 %v973_v28 }
  0x28   :  { %850 = vmatpush3.bf16.msra.mxu0 %v966_v17 }
  0x29   :  { %104 = vperm.xlu1 %961, %v41_v15   ;;  %99 = vperm.xlu0 %960, %v40_v16  }
  0x2a   :  { %851 = vmatprep.subr.bf16.mxu0 %v967_v20  ;;  %880 = vmatpush3.bf16.msra.mxu1 %v973_v28 }
  0x2b   :  { %881 = vmatprep.subr.bf16.mxu1 %v974_v29 }
  0x2c   :  { %852 = vmatpush3.bf16.msra.mxu0 %v967_v20 }
  0x2d   :  { %114 = vperm.xlu1 %961, %v43_v18   ;;  %109 = vperm.xlu0 %960, %v42_v19  }
  0x2e   :  { %853 = vmatprep.subr.bf16.mxu0 %v968_v23  ;;  %882 = vmatpush3.bf16.msra.mxu1 %v974_v29 }
  0x2f   :  { %883 = vmatprep.subr.bf16.mxu1 %v975_v30 }
  0x30   :  { %854 = vmatpush3.bf16.msra.mxu0 %v968_v23 }
  0x31   :  { %124 = vperm.xlu1 %961, %v45_v21   ;;  %119 = vperm.xlu0 %960, %v44_v22  }
  0x32   :  { %855 = vmatprep.subr.bf16.mxu0 %v969_v24  ;;  %884 = vmatpush3.bf16.msra.mxu1 %v975_v30 }
  0x34   :  { %856 = vmatpush3.bf16.msra.mxu0 %v969_v24 }
  0x94   :  { %v60_v38 = vpop.permute.xlu1 %59  ;;  %v50_v39 = vpop.permute.xlu0 %49 }
  0x95   :  { %v133_v40 = vmul.f32 %v1131_v36, %v60_v38  ;;  %v131_v41 = vmul.f32 %v1131_v36, %v50_v39 }
  0x97   :  { %v153_v42 = vadd.f32 %v1134_v37, %v133_v40  ;;  %v151_v45 = vadd.f32 %v1134_v37, %v131_v41 }
  0x98   :  { %v65_v43 = vpop.permute.xlu1 %64  ;;  %v55_v44 = vpop.permute.xlu0 %54 }
  0x99   :  { %v134_v46 = vmul.f32 %v1131_v36, %v65_v43  ;;  %v132_v47 = vmul.f32 %v1131_v36, %v55_v44  ;;  %v169_v50 = vmax.f32 %v153_v42, 0.0  ;;  %v167_v53 = vmax.f32 %v151_v45, 0.0 }
  0x9b   :  { %v154_v48 = vadd.f32 %v1134_v37, %v134_v46  ;;  %v152_v49 = vadd.f32 %v1134_v37, %v132_v47 }
  0x9c   :  { %v75_v51 = vpop.permute.xlu1 %74  ;;  %v70_v52 = vpop.permute.xlu0 %69 }
  0x9d   :  { %v170_v54 = vmax.f32 %v154_v48, 0.0  ;;  %v136_v55 = vmul.f32 %v1131_v36, %v75_v51  ;;  %v135_v56 = vmul.f32 %v1131_v36, %v70_v52  ;;  %v168_v57 = vmax.f32 %v152_v49, 0.0  ;;  %v977_v51 = vld [vmem:[#allocation2 + $0x78] sm:$0xff]   ;;  %v978_v52 = vld [vmem:[#allocation2 + $0x80] sm:$0xff]  }
  0x9e   :  { %905 = vmatprep.subr.bf16.mxu0 %v978_v52 }
  0x9f   :  { %v156_v58 = vadd.f32 %v1134_v37, %v136_v55  ;;  %v155_v59 = vadd.f32 %v1134_v37, %v135_v56  ;;  %v183_v60 = vpack.c.bf16 %v168_v57, %v167_v53  ;;  %v184_v61 = vpack.c.bf16 %v170_v54, %v169_v50  ;;  %v976_v50 = vld [vmem:[#allocation2 + $0x70] sm:$0xff]   ;;  %v979_v53 = vld [vmem:[#allocation2 + $0x88] sm:$0xff]   ;;  %v1171_v54 = vld [vmem:[#allocation2 + $0xa0] sm:$0xff]  }
  0xa0   :  { %v85_v62 = vpop.permute.xlu1 %84  ;;  %v80_v63 = vpop.permute.xlu0 %79  ;;  %885 = vmatprep.subr.bf16.mxu1 %v976_v50  ;;  %v1175_v55 = vld [vmem:[#allocation2 + $0xa8] sm:$0xff]   ;;  %v209_v56 = vsub.s32 2, %v1121_v32 }
  0xa1   :  { %v172_v0 = vmax.f32 %v156_v58, 0.0  ;;  %v171_v1 = vmax.f32 %v155_v59, 0.0  ;;  %v138_v2 = vmul.f32 %v1131_v36, %v85_v62  ;;  %v137_v3 = vmul.f32 %v1131_v36, %v80_v63  ;;  %857 = vmatprep.mubr.bf16.mxu0 %v183_v60  ;;  %886 = vmatpush3.bf16.msra.mxu1 %v976_v50 }
  0xa2   :  { %858 = vmatmul.mubr.bf16.vlgmr.msra.gmra.mrb[0].mxu0 %v184_v61  ;;  %887 = vmatprep.subr.bf16.mxu1 %v977_v51  ;;  %v1182_v57 = vrot.slane %v1127_v34, %v209_v56 }
  0xa3   :  { %v158_v4 = vadd.f32 %v1134_v37, %v138_v2  ;;  %v157_v5 = vadd.f32 %v1134_v37, %v137_v3  ;;  %v185_v6 = vpack.c.bf16 %v172_v0, %v171_v1  ;;  %906 = vmatpush3.bf16.msra.mxu0 %v978_v52 }
  0xa4   :  { %v95_v7 = vpop.permute.xlu1 %94  ;;  %v90_v8 = vpop.permute.xlu0 %89  ;;  %907 = vmatprep.subr.bf16.mxu0 %v979_v53 }
  0xa5   :  { %v174_v9 = vmax.f32 %v158_v4, 0.0  ;;  %v173_v10 = vmax.f32 %v157_v5, 0.0  ;;  %v140_v11 = vmul.f32 %v1131_v36, %v95_v7  ;;  %v139_v12 = vmul.f32 %v1131_v36, %v90_v8  ;;  %861 = vmatprep.mubr.bf16.mxu0 %v185_v6  ;;  %888 = vmatpush3.bf16.msra.mxu1 %v977_v51 }
  0xa6   :  { %937 = vmatprep.subr.bf16.mxu1 %v978_v52 }
  0xa7   :  { %v160_v13 = vadd.f32 %v1134_v37, %v140_v11  ;;  %v159_v14 = vadd.f32 %v1134_v37, %v139_v12  ;;  %v186_v15 = vpack.c.bf16 %v174_v9, %v173_v10  ;;  %908 = vmatpush3.bf16.msra.mxu0 %v979_v53 }
  0xa8   :  { %v105_v16 = vpop.permute.xlu1 %104  ;;  %v100_v17 = vpop.permute.xlu0 %99 }
  0xa9   :  { %v176_v18 = vmax.f32 %v160_v13, 0.0  ;;  %v175_v19 = vmax.f32 %v159_v14, 0.0  ;;  %v142_v20 = vmul.f32 %v1131_v36, %v105_v16  ;;  %v141_v21 = vmul.f32 %v1131_v36, %v100_v17 }
  0xaa   :  { %862 = vmatmul.mubr.bf16.gmra.mrb[4].mxu0 %v186_v15 }
  0xab   :  { %v162_v22 = vadd.f32 %v1134_v37, %v142_v20  ;;  %v161_v23 = vadd.f32 %v1134_v37, %v141_v21  ;;  %v187_v24 = vpack.c.bf16 %v176_v18, %v175_v19 }
  0xac   :  { %v115_v25 = vpop.permute.xlu1 %114  ;;  %v110_v26 = vpop.permute.xlu0 %109 }
  0xad   :  { %v178_v27 = vmax.f32 %v162_v22, 0.0  ;;  %v177_v28 = vmax.f32 %v161_v23, 0.0  ;;  %v144_v29 = vmul.f32 %v1131_v36, %v115_v25  ;;  %v143_v30 = vmul.f32 %v1131_v36, %v110_v26  ;;  %865 = vmatprep.mubr.bf16.mxu0 %v187_v24 }
  0xaf   :  { %v164_v31 = vadd.f32 %v1134_v37, %v144_v29  ;;  %v163_v33 = vadd.f32 %v1134_v37, %v143_v30  ;;  %v188_v35 = vpack.c.bf16 %v178_v27, %v177_v28 }
  0xb0   :  { %v125_v38 = vpop.permute.xlu1 %124  ;;  %v120_v39 = vpop.permute.xlu0 %119 }
  0xb1   :  { %v180_v40 = vmax.f32 %v164_v31, 0.0  ;;  %v179_v41 = vmax.f32 %v163_v33, 0.0  ;;  %v146_v42 = vmul.f32 %v1131_v36, %v125_v38  ;;  %v145_v43 = vmul.f32 %v1131_v36, %v120_v39  ;;  %v980_v36 = vld [vmem:[#allocation2 + $0x90] sm:$0xff]  }
  0xb2   :  { %866 = vmatmul.mubr.bf16.gmra.mrb[8].mxu0 %v188_v35  ;;  %909 = vmatprep.subr.bf16.mxu0 %v980_v36 }
  0xb3   :  { %v166_v44 = vadd.f32 %v1134_v37, %v146_v42  ;;  %v165_v45 = vadd.f32 %v1134_v37, %v145_v43  ;;  %v189_v46 = vpack.c.bf16 %v180_v40, %v179_v41  ;;  %v1168_v37 = vld [vmem:[#allocation2 + $0x98] sm:$0xff]   ;;  %910 = vmatpush3.bf16.msra.mxu0 %v980_v36 }
  0xb4   :  { %911 = vmatprep.subr.bf16.mxu0 %v1168_v37 }
  0xb5   :  { %v182_v47 = vmax.f32 %v166_v44, 0.0  ;;  %v181_v48 = vmax.f32 %v165_v45, 0.0  ;;  %869 = vmatprep.mubr.bf16.mxu0 %v189_v46 }
  0xb7   :  { %v190_v49 = vpack.c.bf16 %v182_v47, %v181_v48  ;;  %912 = vmatpush3.bf16.msra.mxu0 %v1168_v37 }
  0xb8   :  { %913 = vmatprep.subr.bf16.mxu0 %v1171_v54 }
  0xba   :  { %870 = vmatmul.mubr.bf16.gmra.mrb[12].mxu0 %v190_v49 }
  0xbb   :  { %914 = vmatpush3.bf16.msra.mxu0 %v1171_v54 }
  0xbc   :  { %915 = vmatprep.subr.bf16.mxu0 %v1175_v55 }
  0xbf   :  { %916 = vmatpush3.bf16.msra.mxu0 %v1175_v55 }
 0x175   :  { %v859_v58 = vpop.f32.mrb[0].mxu0 }
 0x176   :  { %v302_v59 = vadd.f32 %v859_v58, %v1182_v57  ;;  %v293_v60 = vpop.f32.mrb[1].mxu0 }
 0x177   :  { %v294_v61 = vadd.f32 %v293_v60, %v1182_v57  ;;  %v860_v62 = vpop.f32.mrb[2].mxu0 }
 0x178   :  { %v305_v63 = vadd.f32 %v860_v62, %v1182_v57  ;;  %v296_v0 = vpop.f32.mrb[3].mxu0  ;;  %v358_v2 = vmax.f32 %v302_v59, 0.0 }
 0x179   :  { %v297_v1 = vadd.f32 %v296_v0, %v1182_v57  ;;  %v356_v4 = vmax.f32 %v294_v61, 0.0 }
 0x17a   :  { %v359_v3 = vmax.f32 %v305_v63, 0.0 }
 0x17b   :  { %v357_v5 = vmax.f32 %v297_v1, 0.0 }
 0x17c   :  { %v373_v6 = vpack.c.bf16 %v359_v3, %v358_v2 }
 0x17d   :  { %v863_v7 = vpop.f32.mrb[4].mxu0  ;;  %v372_v8 = vpack.c.bf16 %v357_v5, %v356_v4 }
 0x17e   :  { %v318_v9 = vadd.f32 %v863_v7, %v1182_v57  ;;  %v309_v10 = vpop.f32.mrb[5].mxu0 }
 0x17f   :  { %v310_v11 = vadd.f32 %v309_v10, %v1182_v57  ;;  %v864_v12 = vpop.f32.mrb[6].mxu0  ;;  %889 = vmatprep.mubr.bf16.mxu1 %v372_v8 }
 0x180   :  { %v321_v13 = vadd.f32 %v864_v12, %v1182_v57  ;;  %v312_v14 = vpop.f32.mrb[7].mxu0  ;;  %890 = vmatmul.mubr.bf16.vlgmr.msra.gmra.mrb[0].mxu1 %v373_v6  ;;  %v362_v16 = vmax.f32 %v318_v9, 0.0 }
 0x181   :  { %v313_v15 = vadd.f32 %v312_v14, %v1182_v57  ;;  %945 = vmatpush3.bf16.msra.mxu1 %v978_v52  ;;  %v360_v18 = vmax.f32 %v310_v11, 0.0 }
 0x182   :  { %v363_v17 = vmax.f32 %v321_v13, 0.0  ;;  %938 = vmatprep.subr.bf16.mxu1 %v979_v53 }
 0x183   :  { %v361_v19 = vmax.f32 %v313_v15, 0.0 }
 0x184   :  { %v375_v20 = vpack.c.bf16 %v363_v17, %v362_v16 }
 0x185   :  { %v374_v21 = vpack.c.bf16 %v361_v19, %v360_v18  ;;  %v867_v22 = vpop.f32.mrb[8].mxu0  ;;  %946 = vmatpush3.bf16.msra.mxu1 %v979_v53 }
 0x186   :  { %v334_v23 = vadd.f32 %v867_v22, %v1182_v57  ;;  %v325_v24 = vpop.f32.mrb[9].mxu0  ;;  %939 = vmatprep.subr.bf16.mxu1 %v980_v36 }
 0x187   :  { %v326_v25 = vadd.f32 %v325_v24, %v1182_v57  ;;  %v868_v26 = vpop.f32.mrb[10].mxu0  ;;  %893 = vmatprep.mubr.bf16.mxu1 %v374_v21 }
 0x188   :  { %v337_v27 = vadd.f32 %v868_v26, %v1182_v57  ;;  %v328_v28 = vpop.f32.mrb[11].mxu0  ;;  %894 = vmatmul.mubr.bf16.gmra.mrb[4].mxu1 %v375_v20  ;;  %v366_v30 = vmax.f32 %v334_v23, 0.0 }
 0x189   :  { %v329_v29 = vadd.f32 %v328_v28, %v1182_v57  ;;  %947 = vmatpush3.bf16.msra.mxu1 %v980_v36  ;;  %v364_v33 = vmax.f32 %v326_v25, 0.0  ;;  %v984_v36 = vld [vmem:[#allocation2 + $0xb0] sm:$0xff]  }
 0x18a   :  { %v367_v31 = vmax.f32 %v337_v27, 0.0  ;;  %940 = vmatprep.subr.bf16.mxu1 %v1168_v37  ;;  %917 = vmatprep.subr.bf16.mxu0 %v984_v36 }
 0x18b   :  { %v365_v35 = vmax.f32 %v329_v29, 0.0  ;;  %918 = vmatpush3.bf16.msra.mxu0 %v984_v36 }
 0x18c   :  { %v377_v38 = vpack.c.bf16 %v367_v31, %v366_v30 }
 0x18d   :  { %v376_v39 = vpack.c.bf16 %v365_v35, %v364_v33  ;;  %v871_v40 = vpop.f32.mrb[12].mxu0  ;;  %948 = vmatpush3.bf16.msra.mxu1 %v1168_v37  ;;  %v985_v37 = vld [vmem:[#allocation2 + $0xb8] sm:$0xff]  }
 0x18e   :  { %v350_v41 = vadd.f32 %v871_v40, %v1182_v57  ;;  %v341_v42 = vpop.f32.mrb[13].mxu0  ;;  %941 = vmatprep.subr.bf16.mxu1 %v1171_v54  ;;  %919 = vmatprep.subr.bf16.mxu0 %v985_v37 }
 0x18f   :  { %v342_v43 = vadd.f32 %v341_v42, %v1182_v57  ;;  %v872_v44 = vpop.f32.mrb[14].mxu0  ;;  %897 = vmatprep.mubr.bf16.mxu1 %v376_v39  ;;  %920 = vmatpush3.bf16.msra.mxu0 %v985_v37 }
 0x190   :  { %v353_v45 = vadd.f32 %v872_v44, %v1182_v57  ;;  %v344_v46 = vpop.f32.mrb[15].mxu0  ;;  %898 = vmatmul.mubr.bf16.gmra.mrb[8].mxu1 %v377_v38  ;;  %v370_v48 = vmax.f32 %v350_v41, 0.0 }
 0x191   :  { %v345_v47 = vadd.f32 %v344_v46, %v1182_v57  ;;  %949 = vmatpush3.bf16.msra.mxu1 %v1171_v54  ;;  %v368_v50 = vmax.f32 %v342_v43, 0.0  ;;  %v399_v54 = vsub.s32 3, %v1121_v32 }
 0x192   :  { %v371_v49 = vmax.f32 %v353_v45, 0.0  ;;  %942 = vmatprep.subr.bf16.mxu1 %v1175_v55 }
 0x193   :  { %v369_v51 = vmax.f32 %v345_v47, 0.0  ;;  %v400_v56 = vrot.slane %v1127_v34, %v399_v54 }
 0x194   :  { %v379_v52 = vpack.c.bf16 %v371_v49, %v370_v48 }
 0x195   :  { %v378_v53 = vpack.c.bf16 %v369_v51, %v368_v50  ;;  %950 = vmatpush3.bf16.msra.mxu1 %v1175_v55 }
 0x196   :  { %943 = vmatprep.subr.bf16.mxu1 %v984_v36 }
 0x197   :  { %901 = vmatprep.mubr.bf16.mxu1 %v378_v53 }
 0x198   :  { %902 = vmatmul.mubr.bf16.gmra.mrb[12].mxu1 %v379_v52  ;;  %v589_v52 = vsub.s32 4, %v1121_v32 }
 0x199   :  { %951 = vmatpush3.bf16.msra.mxu1 %v984_v36 }
 0x19a   :  { %944 = vmatprep.subr.bf16.mxu1 %v985_v37  ;;  %v590_v53 = vrot.slane %v1127_v34, %v589_v52 }
 0x19d   :  { %952 = vmatpush3.bf16.msra.mxu1 %v985_v37 }
 0x253   :  { %v891_v57 = vpop.f32.mrb[0].mxu1 }
 0x254   :  { %v492_v58 = vadd.f32 %v891_v57, %v400_v56  ;;  %v483_v59 = vpop.f32.mrb[1].mxu1 }
 0x255   :  { %v484_v55 = vadd.f32 %v483_v59, %v400_v56  ;;  %v892_v60 = vpop.f32.mrb[2].mxu1 }
 0x256   :  { %v495_v61 = vadd.f32 %v892_v60, %v400_v56  ;;  %v486_v62 = vpop.f32.mrb[3].mxu1  ;;  %v548_v0 = vmax.f32 %v492_v58, 0.0 }
 0x257   :  { %v487_v63 = vadd.f32 %v486_v62, %v400_v56  ;;  %v546_v2 = vmax.f32 %v484_v55, 0.0 }
 0x258   :  { %v549_v1 = vmax.f32 %v495_v61, 0.0 }
 0x259   :  { %v547_v3 = vmax.f32 %v487_v63, 0.0 }
 0x25a   :  { %v563_v4 = vpack.c.bf16 %v549_v1, %v548_v0 }
 0x25b   :  { %v562_v5 = vpack.c.bf16 %v547_v3, %v546_v2  ;;  %v895_v6 = vpop.f32.mrb[4].mxu1 }
 0x25c   :  { %v508_v7 = vadd.f32 %v895_v6, %v400_v56  ;;  %v499_v8 = vpop.f32.mrb[5].mxu1 }
 0x25d   :  { %v500_v9 = vadd.f32 %v499_v8, %v400_v56  ;;  %v896_v10 = vpop.f32.mrb[6].mxu1  ;;  %921 = vmatprep.mubr.bf16.mxu0 %v562_v5 }
 0x25e   :  { %v511_v11 = vadd.f32 %v896_v10, %v400_v56  ;;  %v502_v12 = vpop.f32.mrb[7].mxu1  ;;  %922 = vmatmul.mubr.bf16.vlgmr.msra.gmra.mrb[16].mxu0 %v563_v4  ;;  %v552_v14 = vmax.f32 %v508_v7, 0.0 }
 0x25f   :  { %v503_v13 = vadd.f32 %v502_v12, %v400_v56  ;;  %v550_v16 = vmax.f32 %v500_v9, 0.0 }
 0x260   :  { %v553_v15 = vmax.f32 %v511_v11, 0.0 }
 0x261   :  { %v551_v17 = vmax.f32 %v503_v13, 0.0 }
 0x262   :  { %v565_v18 = vpack.c.bf16 %v553_v15, %v552_v14 }
 0x263   :  { %v564_v19 = vpack.c.bf16 %v551_v17, %v550_v16  ;;  %v899_v20 = vpop.f32.mrb[8].mxu1 }
 0x264   :  { %v524_v21 = vadd.f32 %v899_v20, %v400_v56  ;;  %v515_v22 = vpop.f32.mrb[9].mxu1 }
 0x265   :  { %v516_v23 = vadd.f32 %v515_v22, %v400_v56  ;;  %v900_v24 = vpop.f32.mrb[10].mxu1  ;;  %925 = vmatprep.mubr.bf16.mxu0 %v564_v19 }
 0x266   :  { %v527_v25 = vadd.f32 %v900_v24, %v400_v56  ;;  %v518_v26 = vpop.f32.mrb[11].mxu1  ;;  %926 = vmatmul.mubr.bf16.gmra.mrb[20].mxu0 %v565_v18  ;;  %v556_v28 = vmax.f32 %v524_v21, 0.0 }
 0x267   :  { %v519_v27 = vadd.f32 %v518_v26, %v400_v56  ;;  %v554_v30 = vmax.f32 %v516_v23, 0.0 }
 0x268   :  { %v557_v29 = vmax.f32 %v527_v25, 0.0 }
 0x269   :  { %v555_v31 = vmax.f32 %v519_v27, 0.0 }
 0x26a   :  { %v567_v33 = vpack.c.bf16 %v557_v29, %v556_v28 }
 0x26b   :  { %v566_v35 = vpack.c.bf16 %v555_v31, %v554_v30  ;;  %v903_v38 = vpop.f32.mrb[12].mxu1 }
 0x26c   :  { %v540_v39 = vadd.f32 %v903_v38, %v400_v56  ;;  %v531_v40 = vpop.f32.mrb[13].mxu1 }
 0x26d   :  { %v532_v41 = vadd.f32 %v531_v40, %v400_v56  ;;  %v904_v42 = vpop.f32.mrb[14].mxu1  ;;  %929 = vmatprep.mubr.bf16.mxu1 %v566_v35 }
 0x26e   :  { %v543_v43 = vadd.f32 %v904_v42, %v400_v56  ;;  %v534_v44 = vpop.f32.mrb[15].mxu1  ;;  %930 = vmatmul.mubr.bf16.vlgmr.msra.gmra.mrb[16].mxu1 %v567_v33  ;;  %v560_v46 = vmax.f32 %v540_v39, 0.0 }
 0x26f   :  { %v535_v45 = vadd.f32 %v534_v44, %v400_v56  ;;  %v558_v48 = vmax.f32 %v532_v41, 0.0 }
 0x270   :  { %v561_v47 = vmax.f32 %v543_v43, 0.0 }
 0x271   :  { %v559_v49 = vmax.f32 %v535_v45, 0.0 }
 0x272   :  { %v569_v50 = vpack.c.bf16 %v561_v47, %v560_v46 }
 0x273   :  { %v568_v51 = vpack.c.bf16 %v559_v49, %v558_v48 }
 0x275   :  { %933 = vmatprep.mubr.bf16.mxu1 %v568_v51 }
 0x276   :  { %934 = vmatmul.mubr.bf16.gmra.mrb[20].mxu1 %v569_v50 }
 0x331   :  { %v923_v36 = vpop.f32.mrb[16].mxu0 }
 0x332   :  { %v682_v37 = vadd.f32 %v923_v36, %v590_v53  ;;  %v673_v54 = vpop.f32.mrb[17].mxu0 }
 0x333   :  { %v674_v57 = vadd.f32 %v673_v54, %v590_v53  ;;  %v924_v58 = vpop.f32.mrb[18].mxu0 }
 0x334   :  { %738 = vst [vmem:[#allocation5 + $0x10] sm:$0xff] %v682_v37  ;;  %v685_v59 = vadd.f32 %v924_v58, %v590_v53  ;;  %v676_v56 = vpop.f32.mrb[19].mxu0 }
 0x335   :  { %736 = vst [vmem:[#allocation5] sm:$0xff] %v674_v57  ;;  %v677_v55 = vadd.f32 %v676_v56, %v590_v53 }
 0x336   :  { %739 = vst [vmem:[#allocation5 + $0x18] sm:$0xff] %v685_v59 }
 0x337   :  { %737 = vst [vmem:[#allocation5 + $0x8] sm:$0xff] %v677_v55 }
 0x339   :  { %v927_v60 = vpop.f32.mrb[20].mxu0 }
 0x33a   :  { %v698_v61 = vadd.f32 %v927_v60, %v590_v53  ;;  %v689_v62 = vpop.f32.mrb[21].mxu0 }
 0x33b   :  { %v690_v63 = vadd.f32 %v689_v62, %v590_v53  ;;  %v928_v0 = vpop.f32.mrb[22].mxu0 }
 0x33c   :  { %742 = vst [vmem:[#allocation5 + $0x30] sm:$0xff] %v698_v61  ;;  %v701_v32 = vadd.f32 %v928_v0, %v590_v53  ;;  %v692_v34 = vpop.f32.mrb[23].mxu0 }
 0x33d   :  { %740 = vst [vmem:[#allocation5 + $0x20] sm:$0xff] %v690_v63  ;;  %v693_v1 = vadd.f32 %v692_v34, %v590_v53 }
 0x33e   :  { %743 = vst [vmem:[#allocation5 + $0x38] sm:$0xff] %v701_v32 }
 0x33f   :  { %741 = vst [vmem:[#allocation5 + $0x28] sm:$0xff] %v693_v1 }
 0x341   :  { %v931_v2 = vpop.f32.mrb[16].mxu1 }
 0x342   :  { %v714_v3 = vadd.f32 %v931_v2, %v590_v53  ;;  %v705_v4 = vpop.f32.mrb[17].mxu1 }
 0x343   :  { %v706_v5 = vadd.f32 %v705_v4, %v590_v53  ;;  %v932_v6 = vpop.f32.mrb[18].mxu1 }
 0x344   :  { %746 = vst [vmem:[#allocation5 + $0x50] sm:$0xff] %v714_v3  ;;  %v717_v7 = vadd.f32 %v932_v6, %v590_v53  ;;  %v708_v8 = vpop.f32.mrb[19].mxu1 }
 0x345   :  { %744 = vst [vmem:[#allocation5 + $0x40] sm:$0xff] %v706_v5  ;;  %v709_v9 = vadd.f32 %v708_v8, %v590_v53 }
 0x346   :  { %747 = vst [vmem:[#allocation5 + $0x58] sm:$0xff] %v717_v7 }
 0x347   :  { %745 = vst [vmem:[#allocation5 + $0x48] sm:$0xff] %v709_v9 }
 0x349   :  { %v935_v10 = vpop.f32.mrb[20].mxu1 }
 0x34a   :  { %v730_v11 = vadd.f32 %v935_v10, %v590_v53  ;;  %v721_v12 = vpop.f32.mrb[21].mxu1 }
 0x34b   :  { %v722_v13 = vadd.f32 %v721_v12, %v590_v53  ;;  %v936_v14 = vpop.f32.mrb[22].mxu1 }
 0x34c   :  { %750 = vst [vmem:[#allocation5 + $0x70] sm:$0xff] %v730_v11  ;;  %v733_v15 = vadd.f32 %v936_v14, %v590_v53  ;;  %v724_v16 = vpop.f32.mrb[23].mxu1 }
 0x34d   :  { %748 = vst [vmem:[#allocation5 + $0x60] sm:$0xff] %v722_v13  ;;  %v725_v17 = vadd.f32 %v724_v16, %v590_v53 }
 0x34e   :  { %751 = vst [vmem:[#allocation5 + $0x78] sm:$0xff] %v733_v15 }
 0x34f   :  { %749 = vst [vmem:[#allocation5 + $0x68] sm:$0xff] %v725_v17 }
 0x350   :  { %1019 = shalt.err (!%p1016_p12)
}
 0x351   :  { %s1020_s7 = scalar_lea.hbm %s1225_s3, 2048 }
 0x352   :  { %p1021_p13 = scmp.ne.s32.totalorder %s1225_s3, %s1020_s7  ;;  %p1024_p0 = scmp.lt.u32.totalorder %s1020_s7, %s1225_s3 }
 0x354   :  { %p1026_p1 = pnand %p1024_p0, %p1021_p13 }
 0x356   :  { %1029 = shalt.err (!%p1026_p1)
}
 0x357   :  { %s1039_s12 = smov 128   ;;  %s1040_s13 = smov 8  }
 0x358   :  { %763 = dma.vmem_to_hbm [thread:$0]  %s758_s4, 2048, %s1225_s3, [#allocation4], %s1039_s12, %s1039_s12, %s1040_s13  }
 0x359   :  { %1032 = dma.done.wait [#allocation4], 2048  }
 0x35a   :  { %1033 = vsyncadd [#allocation4], 4294965248 }
 0x35b   :  { %767 = vsyncpa [#allocation3], 1 }
 0x35c   :  { %768 = vsyncpa [#allocation4], 1 }

</bundles_post_ra>
